<compile_context>
chip_gen: v6e
topology: v6e:2x2x1
jax: 0.10.0
libtpu: 0.0.40
codegen_flags: <defaults>
</compile_context>

<pallas_src>
import jax
import jax.numpy as jnp
from jax import lax
from jax.experimental import pallas as pl
from jax.experimental.pallas import tpu as pltpu

INPUT_SIZE = 17
HIDDEN_SIZES = [64, 64, 64, 64]
OUTPUT_SIZE = 1


def mlp_kernel(x_ref,
               w0_ref, b0_ref,
               w1_ref, b1_ref,
               w2_ref, b2_ref,
               w3_ref, b3_ref,
               w4_ref, b4_ref,
               o_ref):
    # x_ref: (block_b, 17) f32 tile (batch on sublanes in HBM layout).
    # Weights: bf16, PyTorch (out, in) orientation.  Biases: f32, (out, 1).
    # Activations inside the kernel: (features, block_b) -> batch on lanes.
    x_bf = x_ref[...].astype(jnp.bfloat16)                       # (block_b, 17)

    # Layer 0: W0 (64,17) contracted against x (block_b,17) on the 17-dim
    # (trans-B matmul) -> (64, block_b).  Avoids any wrapper-side transpose.
    h = lax.dot_general(w0_ref[...], x_bf,
                        dimension_numbers=(((1,), (1,)), ((), ())),
                        preferred_element_type=jnp.float32)
    h = jnp.maximum(h + b0_ref[...], 0.0)                        # f32 VPU path

    # Hidden layers 1..3: (64,64) @ (64, block_b).
    for w_ref, b_ref in ((w1_ref, b1_ref), (w2_ref, b2_ref), (w3_ref, b3_ref)):
        h = jnp.dot(w_ref[...], h.astype(jnp.bfloat16),
                    preferred_element_type=jnp.float32)
        h = jnp.maximum(h + b_ref[...], 0.0)

    # Output layer: (1,64) @ (64, block_b) -> lane-dense (1, block_b).
    out = jnp.dot(w4_ref[...], h.astype(jnp.bfloat16),
                  preferred_element_type=jnp.float32) + b4_ref[...]
    o_ref[...] = out.astype(o_ref.dtype)


def hitimed_mlp_forward(x, params, *, block_b=4096):
    """x: (B, 17) float32.
    params: list of (W, b) with W shape (out, in) (PyTorch orientation, f32)
    and b shape (out, 1) (f32).  Returns (B, 1) float32."""
    B, F = x.shape
    assert F == INPUT_SIZE

    if B <= 256:
        # Single full-array block: block dims equal the array dims, which
        # always satisfies the (8,128) rule even for tiny/odd batches.
        block_b = B
    else:
        # Lane-tile multiple of 128; cap at ceil(B/2) (rounded up to 128) so
        # the grid has >= 2 blocks and both v7x TensorCores get work.
        half = (((B + 1) // 2) + 127) // 128 * 128
        block_b = max(128, min(block_b, half))

    num_blocks = pl.cdiv(B, block_b)

    # Input stays (B, 17) in HBM; batch tiled along the sublane axis.
    in_specs = [pl.BlockSpec((block_b, F), lambda i: (i, 0))]
    weight_args = []
    for (w, b) in params:
        weight_args.append(w.astype(jnp.bfloat16))   # bf16 MXU operands
        weight_args.append(b)                         # f32 bias (out, 1)
        in_specs.append(pl.BlockSpec(w.shape, lambda i: (0, 0)))  # resident
        in_specs.append(pl.BlockSpec(b.shape, lambda i: (0, 0)))  # resident

    # Lane-dense output: (1, B) tiled as (1, block_b).
    out_spec = pl.BlockSpec((OUTPUT_SIZE, block_b), lambda i: (0, i))

    out = pl.pallas_call(
        mlp_kernel,
        out_shape=jax.ShapeDtypeStruct((OUTPUT_SIZE, B), jnp.float32),
        grid_spec=pltpu.PrefetchScalarGridSpec(
            num_scalar_prefetch=0,
            grid=(num_blocks,),
            in_specs=in_specs,
            out_specs=out_spec,
        ),
        compiler_params=pltpu.CompilerParams(
            dimension_semantics=("parallel",),  # megacore split on v7x
        ),
    )(x, *weight_args)

    return out[0, :].reshape(B, 1)


def init_params(key):
    """Deterministic init mimicking nn.Linear's U(-1/sqrt(fan_in), 1/sqrt(fan_in)).
    Weights kept in PyTorch orientation (out_features, in_features), f32;
    biases stored as (out_features, 1) so they broadcast over the lane axis."""
    dims = [INPUT_SIZE] + HIDDEN_SIZES + [OUTPUT_SIZE]
    params = []
    for fan_in, fan_out in zip(dims[:-1], dims[1:]):
        key, kw, kb = jax.random.split(key, 3)
        bound = 1.0 / jnp.sqrt(jnp.float32(fan_in))
        w = jax.random.uniform(kw, (fan_out, fan_in), jnp.float32,
                               minval=-bound, maxval=bound)
        b = jax.random.uniform(kb, (fan_out, 1), jnp.float32,
                               minval=-bound, maxval=bound)
        params.append((w, b))
    return params


def reference_forward(x, params):
    h = x
    n = len(params)
    for idx, (w, b) in enumerate(params):
        h = h @ w.T + b.T
        if idx < n - 1:
            h = jnp.maximum(h, 0.0)
    return h


if __name__ == "__main__":
    key = jax.random.PRNGKey(0)
    key, kx = jax.random.split(key)

    B = 8  # small demo batch; kernel uses a single full-array block
    x = jax.random.normal(kx, (B, INPUT_SIZE), jnp.float32)
    params = init_params(key)

    out = hitimed_mlp_forward(x, params)
    out = jax.block_until_ready(out)

    ref = reference_forward(x, params)
    assert out.shape == (B, OUTPUT_SIZE)
    # bf16 matmul operands with f32 accumulation -> relaxed tolerance.
    assert jnp.allclose(out, ref, atol=5e-2, rtol=5e-2), "mismatch vs reference"

    print("KERNEL_OK")
</pallas_src>

<mosaic_0001>
module attributes {stable_mosaic.version = 11 : i64} {
  func.func @mlp_kernel(%arg0: i32, %arg1: memref<8x17xf32, #tpu.memory_space<vmem>>, %arg2: memref<64x17xbf16, #tpu.memory_space<vmem>>, %arg3: memref<64x1xf32, #tpu.memory_space<vmem>>, %arg4: memref<64x64xbf16, #tpu.memory_space<vmem>>, %arg5: memref<64x1xf32, #tpu.memory_space<vmem>>, %arg6: memref<64x64xbf16, #tpu.memory_space<vmem>>, %arg7: memref<64x1xf32, #tpu.memory_space<vmem>>, %arg8: memref<64x64xbf16, #tpu.memory_space<vmem>>, %arg9: memref<64x1xf32, #tpu.memory_space<vmem>>, %arg10: memref<1x64xbf16, #tpu.memory_space<vmem>>, %arg11: memref<1x1xf32, #tpu.memory_space<vmem>>, %arg12: memref<1x8xf32, #tpu.memory_space<vmem>>) attributes {dimension_semantics = [#tpu.dimension_semantics<parallel>], iteration_bounds = array<i64: 1>, scalar_prefetch = 0 : i64, scratch_operands = 0 : i64, tpu.core_type = #tpu.core_type<tc>, window_params = [{transform_indices = @transform_0, window_bounds = array<i64: 8, 17>}, {pipeline_mode = #tpu.pipeline_mode<synchronous>, transform_indices = @transform_1, window_bounds = array<i64: 64, 17>}, {pipeline_mode = #tpu.pipeline_mode<synchronous>, transform_indices = @transform_2, window_bounds = array<i64: 64, 1>}, {pipeline_mode = #tpu.pipeline_mode<synchronous>, transform_indices = @transform_3, window_bounds = array<i64: 64, 64>}, {pipeline_mode = #tpu.pipeline_mode<synchronous>, transform_indices = @transform_4, window_bounds = array<i64: 64, 1>}, {pipeline_mode = #tpu.pipeline_mode<synchronous>, transform_indices = @transform_5, window_bounds = array<i64: 64, 64>}, {pipeline_mode = #tpu.pipeline_mode<synchronous>, transform_indices = @transform_6, window_bounds = array<i64: 64, 1>}, {pipeline_mode = #tpu.pipeline_mode<synchronous>, transform_indices = @transform_7, window_bounds = array<i64: 64, 64>}, {pipeline_mode = #tpu.pipeline_mode<synchronous>, transform_indices = @transform_8, window_bounds = array<i64: 64, 1>}, {pipeline_mode = #tpu.pipeline_mode<synchronous>, transform_indices = @transform_9, window_bounds = array<i64: 1, 64>}, {pipeline_mode = #tpu.pipeline_mode<synchronous>, transform_indices = @transform_10, window_bounds = array<i64: 1, 1>}, {transform_indices = @transform_11, window_bounds = array<i64: 1, 8>}]} {
    %c0 = arith.constant 0 : index
    %c0_0 = arith.constant 0 : index
    %0 = vector.load %arg1[%c0, %c0_0] : memref<8x17xf32, #tpu.memory_space<vmem>>, vector<8x17xf32>
    %1 = arith.truncf %0 : vector<8x17xf32> to vector<8x17xbf16>
    %c0_1 = arith.constant 0 : index
    %c0_2 = arith.constant 0 : index
    %2 = vector.load %arg2[%c0_1, %c0_2] : memref<64x17xbf16, #tpu.memory_space<vmem>>, vector<64x17xbf16>
    %cst = arith.constant dense<0.000000e+00> : vector<64x8xf32>
    %3 = tpu.matmul %2, %1, %cst {dimension_numbers = #tpu.dot_dimension_numbers<[1], [1], [0], [0], [0, 0, 1, 0], [], []>} : vector<64x17xbf16>, vector<8x17xbf16>, vector<64x8xf32> -> vector<64x8xf32>
    %c0_3 = arith.constant 0 : index
    %c0_4 = arith.constant 0 : index
    %4 = vector.load %arg3[%c0_3, %c0_4] : memref<64x1xf32, #tpu.memory_space<vmem>>, vector<64x1xf32>
    %5 = vector.broadcast %4 : vector<64x1xf32> to vector<64x8xf32>
    %6 = arith.addf %3, %5 : vector<64x8xf32>
    %cst_5 = arith.constant 0.000000e+00 : f32
    %7 = vector.broadcast %cst_5 : f32 to vector<64x8xf32>
    %8 = arith.maximumf %6, %7 : vector<64x8xf32>
    %c0_6 = arith.constant 0 : index
    %c0_7 = arith.constant 0 : index
    %9 = vector.load %arg4[%c0_6, %c0_7] : memref<64x64xbf16, #tpu.memory_space<vmem>>, vector<64x64xbf16>
    %10 = arith.truncf %8 : vector<64x8xf32> to vector<64x8xbf16>
    %cst_8 = arith.constant dense<0.000000e+00> : vector<64x8xf32>
    %11 = tpu.matmul %9, %10, %cst_8 {dimension_numbers = #tpu.dot_dimension_numbers<[1], [0], [0], [1], [0, 0, 1, 1], [], []>} : vector<64x64xbf16>, vector<64x8xbf16>, vector<64x8xf32> -> vector<64x8xf32>
    %c0_9 = arith.constant 0 : index
    %c0_10 = arith.constant 0 : index
    %12 = vector.load %arg5[%c0_9, %c0_10] : memref<64x1xf32, #tpu.memory_space<vmem>>, vector<64x1xf32>
    %13 = vector.broadcast %12 : vector<64x1xf32> to vector<64x8xf32>
    %14 = arith.addf %11, %13 : vector<64x8xf32>
    %cst_11 = arith.constant 0.000000e+00 : f32
    %15 = vector.broadcast %cst_11 : f32 to vector<64x8xf32>
    %16 = arith.maximumf %14, %15 : vector<64x8xf32>
    %c0_12 = arith.constant 0 : index
    %c0_13 = arith.constant 0 : index
    %17 = vector.load %arg6[%c0_12, %c0_13] : memref<64x64xbf16, #tpu.memory_space<vmem>>, vector<64x64xbf16>
    %18 = arith.truncf %16 : vector<64x8xf32> to vector<64x8xbf16>
    %cst_14 = arith.constant dense<0.000000e+00> : vector<64x8xf32>
    %19 = tpu.matmul %17, %18, %cst_14 {dimension_numbers = #tpu.dot_dimension_numbers<[1], [0], [0], [1], [0, 0, 1, 1], [], []>} : vector<64x64xbf16>, vector<64x8xbf16>, vector<64x8xf32> -> vector<64x8xf32>
    %c0_15 = arith.constant 0 : index
    %c0_16 = arith.constant 0 : index
    %20 = vector.load %arg7[%c0_15, %c0_16] : memref<64x1xf32, #tpu.memory_space<vmem>>, vector<64x1xf32>
    %21 = vector.broadcast %20 : vector<64x1xf32> to vector<64x8xf32>
    %22 = arith.addf %19, %21 : vector<64x8xf32>
    %cst_17 = arith.constant 0.000000e+00 : f32
    %23 = vector.broadcast %cst_17 : f32 to vector<64x8xf32>
    %24 = arith.maximumf %22, %23 : vector<64x8xf32>
    %c0_18 = arith.constant 0 : index
    %c0_19 = arith.constant 0 : index
    %25 = vector.load %arg8[%c0_18, %c0_19] : memref<64x64xbf16, #tpu.memory_space<vmem>>, vector<64x64xbf16>
    %26 = arith.truncf %24 : vector<64x8xf32> to vector<64x8xbf16>
    %cst_20 = arith.constant dense<0.000000e+00> : vector<64x8xf32>
    %27 = tpu.matmul %25, %26, %cst_20 {dimension_numbers = #tpu.dot_dimension_numbers<[1], [0], [0], [1], [0, 0, 1, 1], [], []>} : vector<64x64xbf16>, vector<64x8xbf16>, vector<64x8xf32> -> vector<64x8xf32>
    %c0_21 = arith.constant 0 : index
    %c0_22 = arith.constant 0 : index
    %28 = vector.load %arg9[%c0_21, %c0_22] : memref<64x1xf32, #tpu.memory_space<vmem>>, vector<64x1xf32>
    %29 = vector.broadcast %28 : vector<64x1xf32> to vector<64x8xf32>
    %30 = arith.addf %27, %29 : vector<64x8xf32>
    %cst_23 = arith.constant 0.000000e+00 : f32
    %31 = vector.broadcast %cst_23 : f32 to vector<64x8xf32>
    %32 = arith.maximumf %30, %31 : vector<64x8xf32>
    %c0_24 = arith.constant 0 : index
    %c0_25 = arith.constant 0 : index
    %33 = vector.load %arg10[%c0_24, %c0_25] : memref<1x64xbf16, #tpu.memory_space<vmem>>, vector<1x64xbf16>
    %34 = arith.truncf %32 : vector<64x8xf32> to vector<64x8xbf16>
    %cst_26 = arith.constant dense<0.000000e+00> : vector<1x8xf32>
    %35 = tpu.matmul %33, %34, %cst_26 {dimension_numbers = #tpu.dot_dimension_numbers<[1], [0], [0], [1], [0, 0, 1, 1], [], []>} : vector<1x64xbf16>, vector<64x8xbf16>, vector<1x8xf32> -> vector<1x8xf32>
    %c0_27 = arith.constant 0 : index
    %c0_28 = arith.constant 0 : index
    %36 = vector.load %arg11[%c0_27, %c0_28] : memref<1x1xf32, #tpu.memory_space<vmem>>, vector<1x1xf32>
    %37 = vector.broadcast %36 : vector<1x1xf32> to vector<1x8xf32>
    %38 = arith.addf %35, %37 : vector<1x8xf32>
    %c0_29 = arith.constant 0 : index
    %c0_30 = arith.constant 0 : index
    %39 = vector.load %arg12[%c0_29, %c0_30] : memref<1x8xf32, #tpu.memory_space<vmem>>, vector<1x8xf32>
    tpu.vector_store %arg12[%c0_29, %c0_30], %38 {strides = array<i32>} : memref<1x8xf32, #tpu.memory_space<vmem>>, vector<1x8xf32>,
    return
  }
  func.func @transform_0(%arg0: i32) -> (i32, i32) {
    %c0_i32 = arith.constant 0 : i32
    %c0_i32_0 = arith.constant 0 : i32
    return %arg0, %c0_i32 : i32, i32
  }
  func.func @transform_1(%arg0: i32) -> (i32, i32) {
    %c0_i32 = arith.constant 0 : i32
    %c0_i32_0 = arith.constant 0 : i32
    %c0_i32_1 = arith.constant 0 : i32
    return %c0_i32, %c0_i32_0 : i32, i32
  }
  func.func @transform_2(%arg0: i32) -> (i32, i32) {
    %c0_i32 = arith.constant 0 : i32
    %c0_i32_0 = arith.constant 0 : i32
    %c0_i32_1 = arith.constant 0 : i32
    return %c0_i32, %c0_i32_0 : i32, i32
  }
  func.func @transform_3(%arg0: i32) -> (i32, i32) {
    %c0_i32 = arith.constant 0 : i32
    %c0_i32_0 = arith.constant 0 : i32
    %c0_i32_1 = arith.constant 0 : i32
    return %c0_i32, %c0_i32_0 : i32, i32
  }
  func.func @transform_4(%arg0: i32) -> (i32, i32) {
    %c0_i32 = arith.constant 0 : i32
    %c0_i32_0 = arith.constant 0 : i32
    %c0_i32_1 = arith.constant 0 : i32
    return %c0_i32, %c0_i32_0 : i32, i32
  }
  func.func @transform_5(%arg0: i32) -> (i32, i32) {
    %c0_i32 = arith.constant 0 : i32
    %c0_i32_0 = arith.constant 0 : i32
    %c0_i32_1 = arith.constant 0 : i32
    return %c0_i32, %c0_i32_0 : i32, i32
  }
  func.func @transform_6(%arg0: i32) -> (i32, i32) {
    %c0_i32 = arith.constant 0 : i32
    %c0_i32_0 = arith.constant 0 : i32
    %c0_i32_1 = arith.constant 0 : i32
    return %c0_i32, %c0_i32_0 : i32, i32
  }
  func.func @transform_7(%arg0: i32) -> (i32, i32) {
    %c0_i32 = arith.constant 0 : i32
    %c0_i32_0 = arith.constant 0 : i32
    %c0_i32_1 = arith.constant 0 : i32
    return %c0_i32, %c0_i32_0 : i32, i32
  }
  func.func @transform_8(%arg0: i32) -> (i32, i32) {
    %c0_i32 = arith.constant 0 : i32
    %c0_i32_0 = arith.constant 0 : i32
    %c0_i32_1 = arith.constant 0 : i32
    return %c0_i32, %c0_i32_0 : i32, i32
  }
  func.func @transform_9(%arg0: i32) -> (i32, i32) {
    %c0_i32 = arith.constant 0 : i32
    %c0_i32_0 = arith.constant 0 : i32
    %c0_i32_1 = arith.constant 0 : i32
    return %c0_i32, %c0_i32_0 : i32, i32
  }
  func.func @transform_10(%arg0: i32) -> (i32, i32) {
    %c0_i32 = arith.constant 0 : i32
    %c0_i32_0 = arith.constant 0 : i32
    %c0_i32_1 = arith.constant 0 : i32
    return %c0_i32, %c0_i32_0 : i32, i32
  }
  func.func @transform_11(%arg0: i32) -> (i32, i32) {
    %c0_i32 = arith.constant 0 : i32
    %c0_i32_0 = arith.constant 0 : i32
    return %c0_i32, %arg0 : i32, i32
  }
}

</mosaic_0001>

<bundles_post_ra>
// kernel: tpu_custom_call.1
= control target key start
LH: loop header
LB: loop body
LE: loop exit
PB: predicated region body
PF: predicated region fallthrough
CT: control target
= control target key end

     0   :  { %s1200_s0 = inlined_call_operand.vmem [shape: f32[8,17], index: 0, kind: input, shape index: {}]   ;;  %s1201_s1 = inlined_call_operand.vmem [shape: bf16[64,17], index: 1, kind: input, shape index: {}]   ;;  %s1202_s2 = inlined_call_operand.vmem [shape: f32[64,1], index: 2, kind: input, shape index: {}]   ;;  %s1203_s3 = inlined_call_operand.vmem [shape: bf16[64,64], index: 3, kind: input, shape index: {}]   ;;  %s1204_s4 = inlined_call_operand.vmem [shape: f32[64,1], index: 4, kind: input, shape index: {}]   ;;  %s1205_s5 = inlined_call_operand.vmem [shape: bf16[64,64], index: 5, kind: input, shape index: {}]   ;;  %s1206_s6 = inlined_call_operand.vmem [shape: f32[64,1], index: 6, kind: input, shape index: {}]   ;;  %s1207_s7 = inlined_call_operand.vmem [shape: bf16[64,64], index: 7, kind: input, shape index: {}]   ;;  %s1208_s8 = inlined_call_operand.vmem [shape: f32[64,1], index: 8, kind: input, shape index: {}]   ;;  %s1209_s9 = inlined_call_operand.vmem [shape: bf16[1,64], index: 9, kind: input, shape index: {}]   ;;  %s1210_s10 = inlined_call_operand.<no memory space> [shape: f32[1,1], index: 10, kind: input, shape index: {}]   ;;  %s1211_s11 = inlined_call_operand.hbm [shape: f32[1,8], index: 11, kind: output, shape index: {}]  }
   0x1   :  { %v16_v0 = vstv %s1210_s10 }
   0x2   :  { %17 = vst [vmem:[#allocation2] sm:$0x1] %v16_v0 }
   0x3   :  { %v42_v1 = vld [vmem:[%s1200_s0] sm:$0xff]  ;;  %vm120_vm0 = vcmask 138240   ;;  %v961_v4 = vmov 0   ;;  %v58_v6 = vld [vmem:[%s1202_s2 + $0x30] sm:$0xff]  ;;  %v59_v8 = vld [vmem:[%s1202_s2 + $0x38] sm:$0xff] }
   0x4   :  { %v43_v2 = vpack.c.bf16 %v42_v1, %v42_v1  ;;  %v923_v3 = vld [vmem:[%s1201_s1] sm:$0xff]   ;;  %921 = vset.pattern.permute.xlu0 %v961_v4  ;;  %922 = vset.pattern.permute.xlu1 %v961_v4  ;;  %v924_v9 = vld [vmem:[%s1201_s1 + $0x8] sm:$0xff]   ;;  %v925_v11 = vld [vmem:[%s1201_s1 + $0x10] sm:$0xff]  }
   0x5   :  { %848 = vmatprep.mubr.msk.bf16.mxu0 %vm120_vm0, %v923_v3  ;;  %92 = vperm.xlu0 %921, %v58_v6   ;;  %v56_v7 = vld [vmem:[%s1202_s2 + $0x20] sm:$0xff]  ;;  %v57_v10 = vld [vmem:[%s1202_s2 + $0x28] sm:$0xff]  ;;  %v54_v12 = vld [vmem:[%s1202_s2 + $0x10] sm:$0xff] }
   0x6   :  { %916 = vmatprep.subr.msk.bf16.mxu0 %vm120_vm0, %v43_v2  ;;  %v134_v5 = vsel %vm120_vm0, %v43_v2, 0  ;;  %82 = vperm.xlu1 %922, %v56_v7   ;;  %v55_v13 = vld [vmem:[%s1202_s2 + $0x18] sm:$0xff]  ;;  %v52_v15 = vld [vmem:[%s1202_s2] sm:$0xff]  ;;  %v53_v16 = vld [vmem:[%s1202_s2 + $0x8] sm:$0xff] }
   0x7   :  { %847 = vmatpush3.bf16.xpose.msra.mxu0 %v134_v5  ;;  %v926_v14 = vld [vmem:[%s1201_s1 + $0x18] sm:$0xff]   ;;  %v227_v17 = vld [vmem:[%s1204_s4 + $0x30] sm:$0xff]  ;;  %v225_v19 = vld [vmem:[%s1204_s4 + $0x20] sm:$0xff] }
   0x8   :  { %v228_v18 = vld [vmem:[%s1204_s4 + $0x38] sm:$0xff]  ;;  %v226_v20 = vld [vmem:[%s1204_s4 + $0x28] sm:$0xff] }
   0x9   :  { %97 = vperm.xlu0 %921, %v59_v8  }
   0xa   :  { %87 = vperm.xlu1 %922, %v57_v10  }
   0xd   :  { %72 = vperm.xlu0 %921, %v54_v12  }
   0xe   :  { %849 = vmatmul.mubr.msk.bf16.vlgmr.msra.gmra.mxu0 %vm120_vm0, %v924_v9  ;;  %77 = vperm.xlu1 %922, %v55_v13  }
   0xf   :  { %852 = vmatprep.mubr.msk.bf16.mxu0 %vm120_vm0, %v925_v11 }
  0x11   :  { %62 = vperm.xlu0 %921, %v52_v15  }
  0x12   :  { %67 = vperm.xlu1 %922, %v53_v16  }
  0x15   :  { %261 = vperm.xlu0 %921, %v227_v17  }
  0x16   :  { %853 = vmatmul.mubr.msk.bf16.gmra.mxu0 %vm120_vm0, %v926_v14  ;;  %266 = vperm.xlu1 %922, %v228_v18  }
  0x17   :  { %18 = vsyncpa [#allocation4], 0  ;;  %v223_v21 = vld [vmem:[%s1204_s4 + $0x10] sm:$0xff]  ;;  %v224_v22 = vld [vmem:[%s1204_s4 + $0x18] sm:$0xff]  ;;  %vm289_vm1 = vcmask 523264   ;;  %vm963_vm2 = vmmov 0  }
  0x18   :  { %v221_v23 = vld [vmem:[%s1204_s4] sm:$0xff]  ;;  %v222_v24 = vld [vmem:[%s1204_s4 + $0x8] sm:$0xff]  ;;  %v393_v25 = vld [vmem:[%s1206_s6 + $0x30] sm:$0xff]  ;;  %s964_s21 = smov [#allocation3]   ;;  %vm763_vm3 = vcmask 57344  }
  0x19   :  { %251 = vperm.xlu0 %921, %v225_v19   ;;  %v394_v26 = vld [vmem:[%s1206_s6 + $0x38] sm:$0xff]  ;;  %v391_v27 = vld [vmem:[%s1206_s6 + $0x20] sm:$0xff]  ;;  %v392_v28 = vld [vmem:[%s1206_s6 + $0x28] sm:$0xff]  ;;  %s771_s22 = sshll.u32 %s964_s21, 4  ;;  %s772_s22 = int_to_ptr.vmem [resolvable:$true] %s771_s22 }
  0x1a   :  { %256 = vperm.xlu1 %922, %v226_v20   ;;  %v389_v29 = vld [vmem:[%s1206_s6 + $0x10] sm:$0xff]  ;;  %v390_v30 = vld [vmem:[%s1206_s6 + $0x18] sm:$0xff]  ;;  %v387_v31 = vld [vmem:[%s1206_s6] sm:$0xff]  ;;  %s939_s10 = scalar_lea.vmem %s772_s22, 16  ;;  %s943_s23 = scalar_lea.vmem %s772_s22, 32 }
  0x1b   :  { %v388_v32 = vld [vmem:[%s1206_s6 + $0x8] sm:$0xff]  ;;  %v558_v33 = vld [vmem:[%s1208_s8 + $0x30] sm:$0xff]  ;;  %v559_v34 = vld [vmem:[%s1208_s8 + $0x38] sm:$0xff]  ;;  %p940_p0 = scmp.ne.s32.totalorder %s772_s22, %s939_s10  ;;  %p944_p1 = scmp.lt.s32.totalorder %s772_s22, %s772_s22 }
  0x1c   :  { %v556_v35 = vld [vmem:[%s1208_s8 + $0x20] sm:$0xff]  ;;  %v557_v36 = vld [vmem:[%s1208_s8 + $0x28] sm:$0xff]  ;;  %v554_v37 = vld [vmem:[%s1208_s8 + $0x10] sm:$0xff]  ;;  %p945_p2 = scmp.lt.s32.totalorder %s943_s23, %s939_s10 }
  0x1d   :  { %241 = vperm.xlu0 %921, %v223_v21   ;;  %v555_v38 = vld [vmem:[%s1208_s8 + $0x18] sm:$0xff]  ;;  %v552_v39 = vld [vmem:[%s1208_s8] sm:$0xff]  ;;  %v553_v40 = vld [vmem:[%s1208_s8 + $0x8] sm:$0xff] }
  0x1e   :  { %246 = vperm.xlu1 %922, %v224_v22   ;;  %v710_v41 = vld [vmem:[#allocation2] sm:$0x1]  ;;  %v928_v15 = vld [vmem:[%s1203_s3 + $0x8] sm:$0xff]   ;;  %v929_v16 = vld [vmem:[%s1203_s3 + $0x10] sm:$0xff]   ;;  %p946_p3 = por %p945_p2, %p944_p1 }
  0x1f   :  { %v927_v42 = vld [vmem:[%s1203_s3] sm:$0xff]   ;;  %v930_v17 = vld [vmem:[%s1203_s3 + $0x18] sm:$0xff]  }
  0x20   :  { %864 = vmatprep.mubr.msk.bf16.mxu1 %vm289_vm1, %v927_v42  ;;  %v931_v18 = vld [vmem:[%s1205_s5] sm:$0xff]   ;;  %p947_p4 = pnand %p946_p3, %p940_p0 }
  0x21   :  { %231 = vperm.xlu0 %921, %v221_v23   ;;  %880 = vmatprep.mubr.msk.bf16.mxu0 %vm289_vm1, %v931_v18 }
  0x22   :  { %236 = vperm.xlu1 %922, %v222_v24  }
  0x25   :  { %427 = vperm.xlu0 %921, %v393_v25  }
  0x26   :  { %432 = vperm.xlu1 %922, %v394_v26  }
  0x29   :  { %417 = vperm.xlu0 %921, %v391_v27  }
  0x2a   :  { %422 = vperm.xlu1 %922, %v392_v28  }
  0x2d   :  { %407 = vperm.xlu0 %921, %v389_v29  }
  0x2e   :  { %412 = vperm.xlu1 %922, %v390_v30  }
  0x31   :  { %397 = vperm.xlu0 %921, %v387_v31  }
  0x32   :  { %402 = vperm.xlu1 %922, %v388_v32  }
  0x35   :  { %592 = vperm.xlu0 %921, %v558_v33  }
  0x36   :  { %597 = vperm.xlu1 %922, %v559_v34  }
  0x39   :  { %582 = vperm.xlu0 %921, %v556_v35  }
  0x3a   :  { %587 = vperm.xlu1 %922, %v557_v36  }
  0x3d   :  { %572 = vperm.xlu0 %921, %v554_v37  }
  0x3e   :  { %577 = vperm.xlu1 %922, %v555_v38  }
  0x41   :  { %562 = vperm.xlu0 %921, %v552_v39  }
  0x42   :  { %567 = vperm.xlu1 %922, %v553_v40  }
  0x45   :  { %713 = vperm.xlu0 %921, %v710_v41  }
  0x80   :  { %v93_v45 = vpop.permute.xlu0 %92 }
  0x81   :  { %v83_v43 = vpop.permute.xlu1 %82 }
  0x84   :  { %v98_v50 = vpop.permute.xlu0 %97 }
  0x85   :  { %v88_v48 = vpop.permute.xlu1 %87 }
  0x88   :  { %v73_v58 = vpop.permute.xlu0 %72 }
  0x89   :  { %v78_v54 = vpop.permute.xlu1 %77 }
  0x8c   :  { %v63_v8 = vpop.permute.xlu0 %62 }
  0x8d   :  { %v68_v4 = vpop.permute.xlu1 %67 }
  0x90   :  { %v262_v21 = vpop.permute.xlu0 %261 }
  0x91   :  { %v267_v19 = vpop.permute.xlu1 %266 }
  0x94   :  { %v252_v26 = vpop.permute.xlu0 %251 }
  0x95   :  { %v257_v24 = vpop.permute.xlu1 %256 }
  0x98   :  { %v242_v34 = vpop.permute.xlu0 %241 }
  0x99   :  { %v247_v30 = vpop.permute.xlu1 %246 }
  0xce   :  { %v850_v44 = vpop.f32.mrf.mxu0 }
  0xcf   :  { %v179_v0 = vadd.f32 %v850_v44, %v73_v58  ;;  %v237_v44 = vpop.permute.xlu1 %236  ;;  %v935_v58 = vld [vmem:[%s1207_s7] sm:$0xff]  }
  0xd0   :  { %v170_v46 = vpop.f32.mrf.mxu0 }
  0xd1   :  { %v203_v9 = vmax.f32 %v179_v0, 0.0  ;;  %v171_v10 = vadd.f32 %v170_v46, %v63_v8 }
  0xd2   :  { %v851_v47 = vpop.f32.mrf.mxu0 }
  0xd3   :  { %v182_v60 = vadd.f32 %v851_v47, %v78_v54  ;;  %v201_v13 = vmax.f32 %v171_v10, 0.0 }
  0xd4   :  { %v173_v49 = vpop.f32.mrf.mxu0 }
  0xd5   :  { %v204_v5 = vmax.f32 %v182_v60, 0.0  ;;  %v174_v6 = vadd.f32 %v173_v49, %v68_v4 }
  0xd6   :  { %v854_v51 = vpop.f32.mrf.mxu0 }
  0xd7   :  { %v195_v53 = vadd.f32 %v854_v51, %v93_v45  ;;  %v218_v11 = vpack.c.bf16 %v204_v5, %v203_v9  ;;  %v202_v12 = vmax.f32 %v174_v6, 0.0 }
  0xd8   :  { %v186_v52 = vpop.f32.mrf.mxu0 }
  0xd9   :  { %v187_v56 = vadd.f32 %v186_v52, %v83_v43  ;;  %v207_v61 = vmax.f32 %v195_v53, 0.0  ;;  %v217_v14 = vpack.c.bf16 %v202_v12, %v201_v13 }
  0xda   :  { %v855_v55 = vpop.f32.mrf.mxu0 }
  0xdb   :  { %v198_v57 = vadd.f32 %v855_v55, %v98_v50  ;;  %v205_v1 = vmax.f32 %v187_v56, 0.0  ;;  %v932_v55 = vld [vmem:[%s1205_s5 + $0x8] sm:$0xff]   ;;  %v933_v56 = vld [vmem:[%s1205_s5 + $0x10] sm:$0xff]  }
  0xdc   :  { %v189_v59 = vpop.f32.mrf.mxu0 }
  0xdd   :  { %v208_v62 = vmax.f32 %v198_v57, 0.0  ;;  %v190_v63 = vadd.f32 %v189_v59, %v88_v48  ;;  %v232_v48 = vpop.permute.xlu0 %231  ;;  %v934_v57 = vld [vmem:[%s1205_s5 + $0x18] sm:$0xff]   ;;  %v433_v59 = vpop.permute.xlu1 %432 }
  0xdf   :  { %v206_v2 = vmax.f32 %v190_v63, 0.0  ;;  %v220_v3 = vpack.c.bf16 %v208_v62, %v207_v61 }
  0xe1   :  { %v219_v7 = vpack.c.bf16 %v206_v2, %v205_v1  ;;  %856 = vmatprep.subr.bf16.mxu1 %v220_v3  ;;  %v428_v61 = vpop.permute.xlu0 %427  ;;  %v423_v0 = vpop.permute.xlu1 %422 }
  0xe2   :  { %857 = vmatpush3.bf16.msra.mxu1 %v220_v3 }
  0xe3   :  { %858 = vmatprep.subr.bf16.mxu1 %v219_v7 }
  0xe5   :  { %v418_v2 = vpop.permute.xlu0 %417  ;;  %v413_v6 = vpop.permute.xlu1 %412 }
  0xe6   :  { %859 = vmatpush3.bf16.msra.mxu1 %v219_v7 }
  0xe7   :  { %860 = vmatprep.subr.bf16.mxu1 %v218_v11 }
  0xe9   :  { %v408_v10 = vpop.permute.xlu0 %407 }
  0xea   :  { %861 = vmatpush3.bf16.msra.mxu1 %v218_v11 }
  0xeb   :  { %862 = vmatprep.subr.bf16.mxu1 %v217_v14 }
  0xee   :  { %863 = vmatpush3.bf16.msra.mxu1 %v217_v14 }
  0xf1   :  { %865 = vmatmul.mubr.msk.bf16.vlgmr.msra.gmra.mxu1 %vm289_vm1, %v928_v15 }
  0xf2   :  { %868 = vmatprep.mubr.msk.bf16.mxu1 %vm289_vm1, %v929_v16 }
  0xf9   :  { %869 = vmatmul.mubr.msk.bf16.gmra.mxu1 %vm289_vm1, %v930_v17 }
  0xfa   :  { %896 = vmatprep.mubr.msk.bf16.mxu1 %vm289_vm1, %v935_v58 }
 0x1b1   :  { %v866_v20 = vpop.f32.mrf.mxu1 }
 0x1b2   :  { %v345_v40 = vadd.f32 %v866_v20, %v242_v34  ;;  %v403_v20 = vpop.permute.xlu1 %402  ;;  %v962_v34 = vmov 0.0  }
 0x1b3   :  { %v336_v22 = vpop.f32.mrf.mxu1 }
 0x1b4   :  { %v369_v49 = vmax.f32 %v345_v40, 0.0  ;;  %v337_v50 = vadd.f32 %v336_v22, %v232_v48 }
 0x1b5   :  { %v867_v23 = vpop.f32.mrf.mxu1 }
 0x1b6   :  { %v348_v36 = vadd.f32 %v867_v23, %v247_v30  ;;  %v367_v53 = vmax.f32 %v337_v50, 0.0 }
 0x1b7   :  { %v339_v25 = vpop.f32.mrf.mxu1 }
 0x1b8   :  { %v370_v45 = vmax.f32 %v348_v36, 0.0  ;;  %v340_v46 = vadd.f32 %v339_v25, %v237_v44  ;;  %v598_v36 = vpop.permute.xlu1 %597 }
 0x1b9   :  { %v870_v27 = vpop.f32.mrf.mxu1 }
 0x1ba   :  { %v361_v29 = vadd.f32 %v870_v27, %v262_v21  ;;  %v384_v51 = vpack.c.bf16 %v370_v45, %v369_v49  ;;  %v368_v52 = vmax.f32 %v340_v46, 0.0 }
 0x1bb   :  { %v352_v28 = vpop.f32.mrf.mxu1 }
 0x1bc   :  { %v353_v32 = vadd.f32 %v352_v28, %v252_v26  ;;  %v373_v37 = vmax.f32 %v361_v29, 0.0  ;;  %v383_v54 = vpack.c.bf16 %v368_v52, %v367_v53 }
 0x1bd   :  { %v871_v31 = vpop.f32.mrf.mxu1 }
 0x1be   :  { %v364_v33 = vadd.f32 %v871_v31, %v267_v19  ;;  %v371_v41 = vmax.f32 %v353_v32, 0.0  ;;  %v936_v31 = vld [vmem:[%s1207_s7 + $0x8] sm:$0xff]   ;;  %v937_v32 = vld [vmem:[%s1207_s7 + $0x10] sm:$0xff]  }
 0x1bf   :  { %v355_v35 = vpop.f32.mrf.mxu1 }
 0x1c0   :  { %v374_v38 = vmax.f32 %v364_v33, 0.0  ;;  %v356_v39 = vadd.f32 %v355_v35, %v257_v24  ;;  %v398_v24 = vpop.permute.xlu0 %397  ;;  %v938_v33 = vld [vmem:[%s1207_s7 + $0x18] sm:$0xff]  }
 0x1c2   :  { %v386_v42 = vpack.c.bf16 %v374_v38, %v373_v37  ;;  %v372_v43 = vmax.f32 %v356_v39, 0.0 }
 0x1c4   :  { %v385_v47 = vpack.c.bf16 %v372_v43, %v371_v41  ;;  %872 = vmatprep.subr.bf16.mxu0 %v386_v42  ;;  %v593_v38 = vpop.permute.xlu0 %592  ;;  %v588_v41 = vpop.permute.xlu1 %587 }
 0x1c5   :  { %873 = vmatpush3.bf16.msra.mxu0 %v386_v42 }
 0x1c6   :  { %874 = vmatprep.subr.bf16.mxu0 %v385_v47 }
 0x1c8   :  { %v583_v43 = vpop.permute.xlu0 %582  ;;  %v578_v48 = vpop.permute.xlu1 %577 }
 0x1c9   :  { %875 = vmatpush3.bf16.msra.mxu0 %v385_v47 }
 0x1ca   :  { %876 = vmatprep.subr.bf16.mxu0 %v384_v51 }
 0x1cd   :  { %877 = vmatpush3.bf16.msra.mxu0 %v384_v51 }
 0x1ce   :  { %878 = vmatprep.subr.bf16.mxu0 %v383_v54 }
 0x1d1   :  { %879 = vmatpush3.bf16.msra.mxu0 %v383_v54  ;;  %v573_v54 = vpop.permute.xlu0 %572 }
 0x1d2   :  { %904 = vmatprep.subr.bf16.mxu0 %v962_v34 }
 0x1d4   :  { %881 = vmatmul.mubr.msk.bf16.vlgmr.msra.gmra.mxu0 %vm289_vm1, %v932_v55 }
 0x1d5   :  { %884 = vmatprep.mubr.msk.bf16.mxu0 %vm289_vm1, %v933_v56 }
 0x1dc   :  { %885 = vmatmul.mubr.msk.bf16.gmra.mxu0 %vm289_vm1, %v934_v57 }
 0x1dd   :  { %912 = vmatprep.mubr.msk.bf16.mxu0 %vm963_vm2, %v962_v34 }
 0x294   :  { %v882_v60 = vpop.f32.mrf.mxu0 }
 0x295   :  { %v510_v16 = vadd.f32 %v882_v60, %v408_v10  ;;  %v568_v60 = vpop.permute.xlu1 %567 }
 0x296   :  { %v501_v62 = vpop.f32.mrf.mxu0 }
 0x297   :  { %v534_v25 = vmax.f32 %v510_v16, 0.0  ;;  %v502_v26 = vadd.f32 %v501_v62, %v398_v24 }
 0x298   :  { %v883_v63 = vpop.f32.mrf.mxu0 }
 0x299   :  { %v513_v12 = vadd.f32 %v883_v63, %v413_v6  ;;  %v532_v29 = vmax.f32 %v502_v26, 0.0 }
 0x29a   :  { %v504_v1 = vpop.f32.mrf.mxu0 }
 0x29b   :  { %v535_v21 = vmax.f32 %v513_v12, 0.0  ;;  %v505_v22 = vadd.f32 %v504_v1, %v403_v20 }
 0x29c   :  { %v886_v3 = vpop.f32.mrf.mxu0 }
 0x29d   :  { %v526_v5 = vadd.f32 %v886_v3, %v428_v61  ;;  %v549_v27 = vpack.c.bf16 %v535_v21, %v534_v25  ;;  %v533_v28 = vmax.f32 %v505_v22, 0.0 }
 0x29e   :  { %v517_v4 = vpop.f32.mrf.mxu0 }
 0x29f   :  { %v518_v8 = vadd.f32 %v517_v4, %v418_v2  ;;  %v538_v13 = vmax.f32 %v526_v5, 0.0  ;;  %v548_v30 = vpack.c.bf16 %v533_v28, %v532_v29 }
 0x2a0   :  { %v887_v7 = vpop.f32.mrf.mxu0 }
 0x2a1   :  { %v529_v9 = vadd.f32 %v887_v7, %v433_v59  ;;  %v536_v17 = vmax.f32 %v518_v8, 0.0  ;;  %v705_v7 = vld [vmem:[%s1209_s9] sm:$0x1]  ;;  %v716_v8 = vlaneseq }
 0x2a2   :  { %v520_v11 = vpop.f32.mrf.mxu0 }
 0x2a3   :  { %v539_v14 = vmax.f32 %v529_v9, 0.0  ;;  %v521_v15 = vadd.f32 %v520_v11, %v423_v0  ;;  %v563_v0 = vpop.permute.xlu0 %562  ;;  %v717_v9 = vshrl.u32 %v716_v8, 7 }
 0x2a5   :  { %v551_v18 = vpack.c.bf16 %v539_v14, %v538_v13  ;;  %v537_v19 = vmax.f32 %v521_v15, 0.0  ;;  %v718_v10 = vsub.s32 0, %v717_v9 }
 0x2a7   :  { %v550_v23 = vpack.c.bf16 %v537_v19, %v536_v17  ;;  %888 = vmatprep.subr.bf16.mxu1 %v551_v18  ;;  %v714_v11 = vpop.permute.xlu0 %713 }
 0x2a8   :  { %889 = vmatpush3.bf16.msra.mxu1 %v551_v18  ;;  %v719_v12 = vrot.slane %v714_v11, %v718_v10 }
 0x2a9   :  { %890 = vmatprep.subr.bf16.mxu1 %v550_v23 }
 0x2ac   :  { %891 = vmatpush3.bf16.msra.mxu1 %v550_v23 }
 0x2ad   :  { %892 = vmatprep.subr.bf16.mxu1 %v549_v27 }
 0x2b0   :  { %893 = vmatpush3.bf16.msra.mxu1 %v549_v27 }
 0x2b1   :  { %894 = vmatprep.subr.bf16.mxu1 %v548_v30 }
 0x2b4   :  { %895 = vmatpush3.bf16.msra.mxu1 %v548_v30 }
 0x2b7   :  { %897 = vmatmul.mubr.msk.bf16.vlgmr.msra.gmra.mxu1 %vm289_vm1, %v936_v31 }
 0x2b8   :  { %900 = vmatprep.mubr.msk.bf16.mxu1 %vm289_vm1, %v937_v32 }
 0x2bf   :  { %901 = vmatmul.mubr.msk.bf16.gmra.mxu1 %vm289_vm1, %v938_v33 }
 0x377   :  { %v898_v35 = vpop.f32.mrf.mxu1 }
 0x378   :  { %v675_v58 = vadd.f32 %v898_v35, %v573_v54 }
 0x379   :  { %v666_v37 = vpop.f32.mrf.mxu1 }
 0x37a   :  { %v699_v1 = vmax.f32 %v675_v58, 0.0  ;;  %v667_v2 = vadd.f32 %v666_v37, %v563_v0 }
 0x37b   :  { %v899_v39 = vpop.f32.mrf.mxu1 }
 0x37c   :  { %v678_v55 = vadd.f32 %v899_v39, %v578_v48  ;;  %v697_v5 = vmax.f32 %v667_v2, 0.0 }
 0x37d   :  { %v669_v40 = vpop.f32.mrf.mxu1 }
 0x37e   :  { %v700_v61 = vmax.f32 %v678_v55, 0.0  ;;  %v670_v62 = vadd.f32 %v669_v40, %v568_v60 }
 0x37f   :  { %v902_v42 = vpop.f32.mrf.mxu1 }
 0x380   :  { %v691_v45 = vadd.f32 %v902_v42, %v593_v38  ;;  %v707_v3 = vpack.c.bf16 %v700_v61, %v699_v1  ;;  %v698_v4 = vmax.f32 %v670_v62, 0.0 }
 0x381   :  { %v682_v44 = vpop.f32.mrf.mxu1 }
 0x382   :  { %v703_v50 = vmax.f32 %v691_v45, 0.0  ;;  %v683_v51 = vadd.f32 %v682_v44, %v583_v43  ;;  %v706_v6 = vpack.c.bf16 %v698_v4, %v697_v5 }
 0x383   :  { %v903_v46 = vpop.f32.mrf.mxu1 }
 0x384   :  { %v694_v47 = vadd.f32 %v903_v46, %v598_v36  ;;  %v701_v59 = vmax.f32 %v683_v51, 0.0 }
 0x385   :  { %v685_v49 = vpop.f32.mrf.mxu1 }
 0x386   :  { %v704_v52 = vmax.f32 %v694_v47, 0.0  ;;  %v686_v53 = vadd.f32 %v685_v49, %v588_v41 }
 0x388   :  { %v709_v56 = vpack.c.bf16 %v704_v52, %v703_v50  ;;  %v702_v57 = vmax.f32 %v686_v53, 0.0 }
 0x38a   :  { %905 = vmatpush3.bf16.msra.mxu0 %v709_v56  ;;  %v708_v63 = vpack.c.bf16 %v702_v57, %v701_v59 }
 0x38b   :  { %906 = vmatprep.subr.bf16.mxu0 %v962_v34 }
 0x38e   :  { %907 = vmatpush3.bf16.msra.mxu0 %v708_v63 }
 0x38f   :  { %908 = vmatprep.subr.bf16.mxu0 %v962_v34 }
 0x392   :  { %909 = vmatpush3.bf16.msra.mxu0 %v707_v3 }
 0x393   :  { %910 = vmatprep.subr.bf16.mxu0 %v962_v34 }
 0x396   :  { %911 = vmatpush3.bf16.msra.mxu0 %v706_v6 }
 0x399   :  { %913 = vmatmul.mubr.msk.bf16.vlgmr.msra.gmra.mxu0 %vm289_vm1, %v705_v7 }
 0x459   :  { %v757_v13 = vpop.f32.mrf.mxu0 }
 0x45a   :  { %v758_v14 = vadd.f32 %v757_v13, %v719_v12 }
 0x45b   :  { %v914_v15 = vpop.f32.mrf.mxu0 }
 0x45c   :  { %764 = vst.msk [vmem:[#allocation3] sm:$0x1] %vm763_vm3, %v758_v14 }
 0x45d   :  { %v760_v16 = vpop.f32.mrf.mxu0 }
 0x45e   :  { %950 = shalt.err (!%p947_p4)
}
 0x45f   :  { %774 = dma.vmem_to_hbm [thread:$0]  %s772_s22, 16, %s1211_s11, [#allocation4]   ;;  %v915_v17 = vpop.f32.mrf.mxu0 }
 0x460   :  { %959 = dma.done.wait [#allocation4], 16  }
 0x461   :  { %960 = vsyncadd [#allocation4], 4294967280 }
 0x462   :  { %778 = vsyncpa [#allocation4], 1 }

</bundles_post_ra>
